<compile_context>
chip_gen: v6e
topology: v6e:2x2x1
jax: 0.10.0
libtpu: 0.0.40
codegen_flags: <defaults>
</compile_context>

<pallas_src>
import functools

import jax
import jax.numpy as jnp
from jax.experimental import pallas as pl
from jax.experimental.pallas import tpu as pltpu


_LANE = 128
_SUBLANE = 8
_NEG_FILL = -1e30  # bias fill for padded logit lanes -> exp underflows to 0


def _round_up(n, m):
    return ((n + m - 1) // m) * m


def chart_predictor_kernel(
    x_ref,                                      # (row_tile, Dp)
    g_ref,                                      # (row_tile, Yp) gumbel noise
    w1_ref, b1_ref, w2_ref, b2_ref, w3_ref, b3_ref,
    gum_out_ref, probs_out_ref,                 # (row_tile, Yp)
    *, inv_temperature,
):
    f32 = jnp.float32
    x = x_ref[...]

    # 3-layer MLP; all operands 128-lane padded -> dense MXU matmuls.
    h = jnp.maximum(
        jnp.dot(x, w1_ref[...], preferred_element_type=f32) + b1_ref[...], 0.0)
    h = jnp.maximum(
        jnp.dot(h, w2_ref[...], preferred_element_type=f32) + b2_ref[...], 0.0)
    logit = jnp.dot(h, w3_ref[...], preferred_element_type=f32) + b3_ref[...]
    # Padded output lanes carry b3 == -1e30, so exp(logit - max) == 0 there.

    # probs = softmax(logit, axis=-1)
    m = jnp.max(logit, axis=-1, keepdims=True)
    e = jnp.exp(logit - m)
    probs = e / jnp.sum(e, axis=-1, keepdims=True)

    # gumbel_softmax(logit, T) = softmax((logit + g) / T)
    gl = (logit + g_ref[...]) * inv_temperature
    gm = jnp.max(gl, axis=-1, keepdims=True)
    ge = jnp.exp(gl - gm)
    gum = ge / jnp.sum(ge, axis=-1, keepdims=True)

    gum_out_ref[...] = gum.astype(gum_out_ref.dtype)
    probs_out_ref[...] = probs.astype(probs_out_ref.dtype)


def chart_predictor_2d(x, params, *, temperature=0.1, rng_key=None):
    """Pallas implementation of ChartPredictor2d.forward.

    x: (..., x_dim) float32.  Weights are (in, out); biases are (1, out).
    Returns (gumbel_softmax(logit, T), softmax(logit)), both (..., y_dim).
    """
    if rng_key is None:
        rng_key = jax.random.PRNGKey(0)

    x = jnp.asarray(x, jnp.float32)
    *lead, x_dim = x.shape
    h_dim = params["w1"].shape[1]
    y_dim = params["w3"].shape[1]

    # Flatten leading dims into one row axis; pad rows / lanes.
    N = 1
    for d in lead:
        N *= d
    x2 = x.reshape(N, x_dim)

    Dp = _round_up(x_dim, _LANE)
    Hp = _round_up(h_dim, _LANE)
    Yp = _round_up(y_dim, _LANE)

    row_tile = min(512, _round_up(N, _SUBLANE))
    N_pad = _round_up(N, row_tile)
    num_tiles = N_pad // row_tile

    def pad2(a, r, c, fill=0.0):
        a = jnp.asarray(a, jnp.float32)
        return jnp.pad(a, ((0, r - a.shape[0]), (0, c - a.shape[1])),
                       constant_values=fill)

    x_p = pad2(x2, N_pad, Dp)
    w1 = pad2(params["w1"], Dp, Hp); b1 = pad2(params["b1"], 1, Hp)
    w2 = pad2(params["w2"], Hp, Hp); b2 = pad2(params["b2"], 1, Hp)
    w3 = pad2(params["w3"], Hp, Yp); b3 = pad2(params["b3"], 1, Yp, fill=_NEG_FILL)

    # Gumbel noise sampled outside the kernel (portable; the in-kernel HW PRNG
    # has no CPU-interpret lowering).  Padded lanes see logit == -1e30 so any
    # finite noise there still underflows to 0 after the softmax.
    gumbel = jax.random.gumbel(rng_key, (N_pad, Yp), dtype=jnp.float32)

    def full_spec(shape):
        return pl.BlockSpec(shape, lambda i, _shape=shape: tuple(0 for _ in _shape))

    def row_spec(cols):
        return pl.BlockSpec((row_tile, cols), lambda i: (i, 0))

    kernel = functools.partial(chart_predictor_kernel,
                               inv_temperature=float(1.0 / temperature))

    gum_p, probs_p = pl.pallas_call(
        kernel,
        out_shape=(jax.ShapeDtypeStruct((N_pad, Yp), jnp.float32),
                   jax.ShapeDtypeStruct((N_pad, Yp), jnp.float32)),
        grid=(num_tiles,),
        in_specs=[
            row_spec(Dp),                          # x rows
            row_spec(Yp),                          # gumbel noise rows
            full_spec((Dp, Hp)), full_spec((1, Hp)),   # fc1_y
            full_spec((Hp, Hp)), full_spec((1, Hp)),   # fc2_y
            full_spec((Hp, Yp)), full_spec((1, Yp)),   # fc3_y
        ],
        out_specs=(row_spec(Yp), row_spec(Yp)),
        compiler_params=pltpu.CompilerParams(
            dimension_semantics=("parallel",),
            vmem_limit_bytes=32 * 1024 * 1024,     # safe on v5e/v6e/v7x
        ),
    )(x_p, gumbel, w1, b1, w2, b2, w3, b3)

    out_shape = tuple(lead) + (y_dim,)
    gum = gum_p[:N, :y_dim].reshape(out_shape)
    probs = probs_p[:N, :y_dim].reshape(out_shape)
    return gum, probs


if __name__ == "__main__":
    B = 8
    x_dim, h_dim, y_dim = 32, 32, 16
    temperature = 0.1

    key = jax.random.PRNGKey(0)
    kx, kp, kg = jax.random.split(key, 3)
    x = jax.random.normal(kx, (B, x_dim), dtype=jnp.float32)

    ks = jax.random.split(kp, 6)
    scale = 0.1
    params = {
        "w1": scale * jax.random.normal(ks[0], (x_dim, h_dim), dtype=jnp.float32),
        "b1": scale * jax.random.normal(ks[1], (1, h_dim), dtype=jnp.float32),
        "w2": scale * jax.random.normal(ks[2], (h_dim, h_dim), dtype=jnp.float32),
        "b2": scale * jax.random.normal(ks[3], (1, h_dim), dtype=jnp.float32),
        "w3": scale * jax.random.normal(ks[4], (h_dim, y_dim), dtype=jnp.float32),
        "b3": scale * jax.random.normal(ks[5], (1, y_dim), dtype=jnp.float32),
    }

    gum, probs = chart_predictor_2d(x, params, temperature=temperature, rng_key=kg)
    jax.block_until_ready((gum, probs))

    # Pure-JAX reference for the deterministic branch (softmax of logits).
    h = jax.nn.relu(x @ params["w1"] + params["b1"])
    h = jax.nn.relu(h @ params["w2"] + params["b2"])
    logit_ref = h @ params["w3"] + params["b3"]
    probs_ref = jax.nn.softmax(logit_ref, axis=-1)

    assert gum.shape == (B, y_dim) and probs.shape == (B, y_dim)
    assert bool(jnp.all(jnp.isfinite(gum))) and bool(jnp.all(jnp.isfinite(probs)))
    assert float(jnp.max(jnp.abs(probs - probs_ref))) < 1e-2
    assert float(jnp.max(jnp.abs(jnp.sum(probs, axis=-1) - 1.0))) < 1e-2
    assert float(jnp.max(jnp.abs(jnp.sum(gum, axis=-1) - 1.0))) < 1e-2
    print("KERNEL_OK")
</pallas_src>

<mosaic_0001>
module attributes {stable_mosaic.version = 11 : i64} {
  func.func @chart_predictor_kernel(%arg0: i32, %arg1: memref<8x128xf32, #tpu.memory_space<vmem>>, %arg2: memref<8x128xf32, #tpu.memory_space<vmem>>, %arg3: memref<128x128xf32, #tpu.memory_space<vmem>>, %arg4: memref<1x128xf32, #tpu.memory_space<vmem>>, %arg5: memref<128x128xf32, #tpu.memory_space<vmem>>, %arg6: memref<1x128xf32, #tpu.memory_space<vmem>>, %arg7: memref<128x128xf32, #tpu.memory_space<vmem>>, %arg8: memref<1x128xf32, #tpu.memory_space<vmem>>, %arg9: memref<8x128xf32, #tpu.memory_space<vmem>>, %arg10: memref<8x128xf32, #tpu.memory_space<vmem>>) attributes {dimension_semantics = [#tpu.dimension_semantics<parallel>], iteration_bounds = array<i64: 1>, scalar_prefetch = 0 : i64, scratch_operands = 0 : i64, tpu.core_type = #tpu.core_type<tc>, window_params = [{transform_indices = @transform_0, window_bounds = array<i64: 8, 128>}, {transform_indices = @transform_1, window_bounds = array<i64: 8, 128>}, {pipeline_mode = #tpu.pipeline_mode<synchronous>, transform_indices = @transform_2, window_bounds = array<i64: 128, 128>}, {pipeline_mode = #tpu.pipeline_mode<synchronous>, transform_indices = @transform_3, window_bounds = array<i64: 1, 128>}, {pipeline_mode = #tpu.pipeline_mode<synchronous>, transform_indices = @transform_4, window_bounds = array<i64: 128, 128>}, {pipeline_mode = #tpu.pipeline_mode<synchronous>, transform_indices = @transform_5, window_bounds = array<i64: 1, 128>}, {pipeline_mode = #tpu.pipeline_mode<synchronous>, transform_indices = @transform_6, window_bounds = array<i64: 128, 128>}, {pipeline_mode = #tpu.pipeline_mode<synchronous>, transform_indices = @transform_7, window_bounds = array<i64: 1, 128>}, {transform_indices = @transform_8, window_bounds = array<i64: 8, 128>}, {transform_indices = @transform_9, window_bounds = array<i64: 8, 128>}]} {
    %c0 = arith.constant 0 : index
    %c0_0 = arith.constant 0 : index
    %0 = vector.load %arg1[%c0, %c0_0] : memref<8x128xf32, #tpu.memory_space<vmem>>, vector<8x128xf32>
    %c0_1 = arith.constant 0 : index
    %c0_2 = arith.constant 0 : index
    %1 = vector.load %arg3[%c0_1, %c0_2] : memref<128x128xf32, #tpu.memory_space<vmem>>, vector<128x128xf32>
    %cst = arith.constant dense<0.000000e+00> : vector<8x128xf32>
    %2 = tpu.matmul %0, %1, %cst {dimension_numbers = #tpu.dot_dimension_numbers<[1], [0], [0], [1], [0, 0, 1, 1], [], []>} : vector<8x128xf32>, vector<128x128xf32>, vector<8x128xf32> -> vector<8x128xf32>
    %c0_3 = arith.constant 0 : index
    %c0_4 = arith.constant 0 : index
    %3 = vector.load %arg4[%c0_3, %c0_4] : memref<1x128xf32, #tpu.memory_space<vmem>>, vector<1x128xf32>
    %4 = vector.broadcast %3 : vector<1x128xf32> to vector<8x128xf32>
    %5 = arith.addf %2, %4 : vector<8x128xf32>
    %cst_5 = arith.constant 0.000000e+00 : f32
    %6 = vector.broadcast %cst_5 : f32 to vector<8x128xf32>
    %7 = arith.maximumf %5, %6 : vector<8x128xf32>
    %c0_6 = arith.constant 0 : index
    %c0_7 = arith.constant 0 : index
    %8 = vector.load %arg5[%c0_6, %c0_7] : memref<128x128xf32, #tpu.memory_space<vmem>>, vector<128x128xf32>
    %cst_8 = arith.constant dense<0.000000e+00> : vector<8x128xf32>
    %9 = tpu.matmul %7, %8, %cst_8 {dimension_numbers = #tpu.dot_dimension_numbers<[1], [0], [0], [1], [0, 0, 1, 1], [], []>} : vector<8x128xf32>, vector<128x128xf32>, vector<8x128xf32> -> vector<8x128xf32>
    %c0_9 = arith.constant 0 : index
    %c0_10 = arith.constant 0 : index
    %10 = vector.load %arg6[%c0_9, %c0_10] : memref<1x128xf32, #tpu.memory_space<vmem>>, vector<1x128xf32>
    %11 = vector.broadcast %10 : vector<1x128xf32> to vector<8x128xf32>
    %12 = arith.addf %9, %11 : vector<8x128xf32>
    %cst_11 = arith.constant 0.000000e+00 : f32
    %13 = vector.broadcast %cst_11 : f32 to vector<8x128xf32>
    %14 = arith.maximumf %12, %13 : vector<8x128xf32>
    %c0_12 = arith.constant 0 : index
    %c0_13 = arith.constant 0 : index
    %15 = vector.load %arg7[%c0_12, %c0_13] : memref<128x128xf32, #tpu.memory_space<vmem>>, vector<128x128xf32>
    %cst_14 = arith.constant dense<0.000000e+00> : vector<8x128xf32>
    %16 = tpu.matmul %14, %15, %cst_14 {dimension_numbers = #tpu.dot_dimension_numbers<[1], [0], [0], [1], [0, 0, 1, 1], [], []>} : vector<8x128xf32>, vector<128x128xf32>, vector<8x128xf32> -> vector<8x128xf32>
    %c0_15 = arith.constant 0 : index
    %c0_16 = arith.constant 0 : index
    %17 = vector.load %arg8[%c0_15, %c0_16] : memref<1x128xf32, #tpu.memory_space<vmem>>, vector<1x128xf32>
    %18 = vector.broadcast %17 : vector<1x128xf32> to vector<8x128xf32>
    %19 = arith.addf %16, %18 : vector<8x128xf32>
    %cst_17 = arith.constant dense<0xFF800000> : vector<8xf32>
    %20 = vector.multi_reduction <maximumf>, %19, %cst_17 [1] : vector<8x128xf32> to vector<8xf32>
    %21 = vector.shape_cast %20 : vector<8xf32> to vector<8x1xf32>
    %22 = vector.broadcast %21 : vector<8x1xf32> to vector<8x128xf32>
    %23 = arith.subf %19, %22 : vector<8x128xf32>
    %24 = math.exp %23 : vector<8x128xf32>
    %cst_18 = arith.constant dense<0.000000e+00> : vector<8xf32>
    %25 = vector.multi_reduction <add>, %24, %cst_18 [1] : vector<8x128xf32> to vector<8xf32>
    %26 = vector.shape_cast %25 : vector<8xf32> to vector<8x1xf32>
    %27 = vector.broadcast %26 : vector<8x1xf32> to vector<8x128xf32>
    %28 = arith.divf %24, %27 : vector<8x128xf32>
    %c0_19 = arith.constant 0 : index
    %c0_20 = arith.constant 0 : index
    %29 = vector.load %arg2[%c0_19, %c0_20] : memref<8x128xf32, #tpu.memory_space<vmem>>, vector<8x128xf32>
    %30 = arith.addf %19, %29 : vector<8x128xf32>
    %cst_21 = arith.constant 1.000000e+01 : f32
    %31 = vector.broadcast %cst_21 : f32 to vector<8x128xf32>
    %32 = arith.mulf %30, %31 : vector<8x128xf32>
    %cst_22 = arith.constant dense<0xFF800000> : vector<8xf32>
    %33 = vector.multi_reduction <maximumf>, %32, %cst_22 [1] : vector<8x128xf32> to vector<8xf32>
    %34 = vector.shape_cast %33 : vector<8xf32> to vector<8x1xf32>
    %35 = vector.broadcast %34 : vector<8x1xf32> to vector<8x128xf32>
    %36 = arith.subf %32, %35 : vector<8x128xf32>
    %37 = math.exp %36 : vector<8x128xf32>
    %cst_23 = arith.constant dense<0.000000e+00> : vector<8xf32>
    %38 = vector.multi_reduction <add>, %37, %cst_23 [1] : vector<8x128xf32> to vector<8xf32>
    %39 = vector.shape_cast %38 : vector<8xf32> to vector<8x1xf32>
    %40 = vector.broadcast %39 : vector<8x1xf32> to vector<8x128xf32>
    %41 = arith.divf %37, %40 : vector<8x128xf32>
    %c0_24 = arith.constant 0 : index
    %c0_25 = arith.constant 0 : index
    %42 = vector.load %arg9[%c0_24, %c0_25] : memref<8x128xf32, #tpu.memory_space<vmem>>, vector<8x128xf32>
    tpu.vector_store %arg9[%c0_24, %c0_25], %41 {strides = array<i32>} : memref<8x128xf32, #tpu.memory_space<vmem>>, vector<8x128xf32>,
    %c0_26 = arith.constant 0 : index
    %c0_27 = arith.constant 0 : index
    %43 = vector.load %arg10[%c0_26, %c0_27] : memref<8x128xf32, #tpu.memory_space<vmem>>, vector<8x128xf32>
    tpu.vector_store %arg10[%c0_26, %c0_27], %28 {strides = array<i32>} : memref<8x128xf32, #tpu.memory_space<vmem>>, vector<8x128xf32>,
    return
  }
  func.func @transform_0(%arg0: i32) -> (i32, i32) {
    %c0_i32 = arith.constant 0 : i32
    %c0_i32_0 = arith.constant 0 : i32
    return %arg0, %c0_i32 : i32, i32
  }
  func.func @transform_1(%arg0: i32) -> (i32, i32) {
    %c0_i32 = arith.constant 0 : i32
    %c0_i32_0 = arith.constant 0 : i32
    return %arg0, %c0_i32 : i32, i32
  }
  func.func @transform_2(%arg0: i32) -> (i32, i32) {
    %c0_i32 = arith.constant 0 : i32
    %c0_i32_0 = arith.constant 0 : i32
    %c0_i32_1 = arith.constant 0 : i32
    return %c0_i32, %c0_i32_0 : i32, i32
  }
  func.func @transform_3(%arg0: i32) -> (i32, i32) {
    %c0_i32 = arith.constant 0 : i32
    %c0_i32_0 = arith.constant 0 : i32
    %c0_i32_1 = arith.constant 0 : i32
    return %c0_i32, %c0_i32_0 : i32, i32
  }
  func.func @transform_4(%arg0: i32) -> (i32, i32) {
    %c0_i32 = arith.constant 0 : i32
    %c0_i32_0 = arith.constant 0 : i32
    %c0_i32_1 = arith.constant 0 : i32
    return %c0_i32, %c0_i32_0 : i32, i32
  }
  func.func @transform_5(%arg0: i32) -> (i32, i32) {
    %c0_i32 = arith.constant 0 : i32
    %c0_i32_0 = arith.constant 0 : i32
    %c0_i32_1 = arith.constant 0 : i32
    return %c0_i32, %c0_i32_0 : i32, i32
  }
  func.func @transform_6(%arg0: i32) -> (i32, i32) {
    %c0_i32 = arith.constant 0 : i32
    %c0_i32_0 = arith.constant 0 : i32
    %c0_i32_1 = arith.constant 0 : i32
    return %c0_i32, %c0_i32_0 : i32, i32
  }
  func.func @transform_7(%arg0: i32) -> (i32, i32) {
    %c0_i32 = arith.constant 0 : i32
    %c0_i32_0 = arith.constant 0 : i32
    %c0_i32_1 = arith.constant 0 : i32
    return %c0_i32, %c0_i32_0 : i32, i32
  }
  func.func @transform_8(%arg0: i32) -> (i32, i32) {
    %c0_i32 = arith.constant 0 : i32
    %c0_i32_0 = arith.constant 0 : i32
    return %arg0, %c0_i32 : i32, i32
  }
  func.func @transform_9(%arg0: i32) -> (i32, i32) {
    %c0_i32 = arith.constant 0 : i32
    %c0_i32_0 = arith.constant 0 : i32
    return %arg0, %c0_i32 : i32, i32
  }
}

</mosaic_0001>

<bundles_post_ra>
// kernel: tpu_custom_call.1
= control target key start
LH: loop header
LB: loop body
LE: loop exit
PB: predicated region body
PF: predicated region fallthrough
CT: control target
= control target key end

     0   :  { %15 = vsyncpa [#allocation3], 0  ;;  %s915_s0 = inlined_call_operand.hbm [shape: f32[8,128], index: 0, kind: input, shape index: {}]   ;;  %s916_s1 = inlined_call_operand.hbm [shape: f32[8,128], index: 1, kind: input, shape index: {}]   ;;  %s917_s2 = inlined_call_operand.hbm [shape: f32[128,128], index: 2, kind: input, shape index: {}]   ;;  %s918_s3 = inlined_call_operand.vmem [shape: f32[1,128], index: 3, kind: input, shape index: {}]   ;;  %s919_s4 = inlined_call_operand.hbm [shape: f32[128,128], index: 4, kind: input, shape index: {}]   ;;  %s920_s5 = inlined_call_operand.vmem [shape: f32[1,128], index: 5, kind: input, shape index: {}]   ;;  %s921_s6 = inlined_call_operand.hbm [shape: f32[128,128], index: 6, kind: input, shape index: {}]   ;;  %s922_s7 = inlined_call_operand.vmem [shape: f32[1,128], index: 7, kind: input, shape index: {}]   ;;  %s923_s8 = inlined_call_operand.hbm [shape: f32[8,128], index: 8, kind: output, shape index: {0}]   ;;  %s924_s9 = inlined_call_operand.hbm [shape: f32[8,128], index: 9, kind: output, shape index: {1}]  }
   0x1   :  { %16 = vsyncpa [#allocation6], 0 }
   0x2   :  { %17 = vsyncpa [#allocation9], 0 }
   0x3   :  { %18 = vsyncpa [#allocation4], 0 }
   0x4   :  { %19 = vsyncpa [#allocation13], 0  ;;  %s761_s30 = smov [#allocation5]  }
   0x5   :  { %s36_s10 = sshll.u32 %s761_s30, 4  ;;  %s37_s10 = int_to_ptr.vmem [resolvable:$true] %s36_s10 }
   0x6   :  { %s619_s11 = scalar_lea.vmem %s37_s10, 128  ;;  %p624_p1 = scmp.lt.s32.totalorder %s37_s10, %s37_s10 }
   0x7   :  { %p620_p0 = scmp.ne.s32.totalorder %s37_s10, %s619_s11  ;;  %p625_p2 = scmp.lt.s32.totalorder %s619_s11, %s619_s11 }
   0x9   :  { %p626_p3 = por %p625_p2, %p624_p1 }
   0xb   :  { %p627_p4 = pnand %p626_p3, %p620_p0 }
   0xd   :  { %630 = shalt.err (!%p627_p4)
}
   0xe   :  { %39 = dma.hbm_to_vmem [thread:$0]  %s916_s1, 128, %s37_s10, [#allocation6]  }
   0xf   :  { %s762_s14 = smov [#allocation8]   ;;  %s763_s16 = smov [#allocation2]  }
  0x10   :  { %s59_s15 = sshll.u32 %s762_s14, 4  ;;  %s26_s17 = sshll.u32 %s763_s16, 4  ;;  %s60_s15 = int_to_ptr.vmem [resolvable:$true] %s59_s15  ;;  %s27_s17 = int_to_ptr.vmem [resolvable:$true] %s26_s17 }
  0x11   :  { %s639_s18 = scalar_lea.vmem %s60_s15, 2048  ;;  %p644_p6 = scmp.lt.s32.totalorder %s60_s15, %s60_s15 }
  0x12   :  { %p640_p5 = scmp.ne.s32.totalorder %s60_s15, %s639_s18  ;;  %p645_p7 = scmp.lt.s32.totalorder %s639_s18, %s639_s18 }
  0x14   :  { %p646_p8 = por %p645_p7, %p644_p6 }
  0x16   :  { %p647_p9 = pnand %p646_p8, %p640_p5 }
  0x18   :  { %650 = shalt.err (!%p647_p9)
}
  0x19   :  { %s764_s19 = smov 128   ;;  %s765_s20 = smov 8  }
  0x1a   :  { %65 = dma.hbm_to_vmem [thread:$0]  %s919_s4, 2048, %s60_s15, [#allocation9], %s764_s19, %s764_s19, %s765_s20  }
  0x1b   :  { %s659_s1 = scalar_lea.vmem %s27_s17, 128  ;;  %p664_p11 = scmp.lt.s32.totalorder %s27_s17, %s27_s17 }
  0x1c   :  { %p660_p10 = scmp.ne.s32.totalorder %s27_s17, %s659_s1  ;;  %p665_p12 = scmp.lt.s32.totalorder %s659_s1, %s659_s1 }
  0x1e   :  { %p666_p13 = por %p665_p12, %p664_p11 }
  0x20   :  { %p667_p0 = pnand %p666_p13, %p660_p10 }
  0x22   :  { %670 = shalt.err (!%p667_p0)
}
  0x23   :  { %29 = dma.hbm_to_vmem [thread:$0]  %s915_s0, 128, %s27_s17, [#allocation3]  }
  0x24   :  { %s766_s25 = smov [#allocation7]   ;;  %s767_s27 = smov [#allocation10]  }
  0x25   :  { %s45_s26 = sshll.u32 %s766_s25, 4  ;;  %s73_s28 = sshll.u32 %s767_s27, 4  ;;  %s46_s26 = int_to_ptr.vmem [resolvable:$true] %s45_s26  ;;  %s74_s28 = int_to_ptr.vmem [resolvable:$true] %s73_s28 }
  0x26   :  { %s679_s29 = scalar_lea.vmem %s46_s26, 2048  ;;  %p684_p2 = scmp.lt.s32.totalorder %s46_s26, %s46_s26 }
  0x27   :  { %p680_p1 = scmp.ne.s32.totalorder %s46_s26, %s679_s29  ;;  %p685_p3 = scmp.lt.s32.totalorder %s679_s29, %s679_s29 }
  0x29   :  { %p686_p4 = por %p685_p3, %p684_p2 }
  0x2b   :  { %p687_p5 = pnand %p686_p4, %p680_p1 }
  0x2d   :  { %690 = shalt.err (!%p687_p5)
}
  0x2e   :  { %51 = dma.hbm_to_vmem [thread:$0]  %s917_s2, 2048, %s46_s26, [#allocation6], %s764_s19, %s764_s19, %s765_s20  }
  0x2f   :  { %s699_s0 = scalar_lea.vmem %s74_s28, 2048  ;;  %p704_p7 = scmp.lt.s32.totalorder %s74_s28, %s74_s28 }
  0x30   :  { %p700_p6 = scmp.ne.s32.totalorder %s74_s28, %s699_s0  ;;  %p705_p8 = scmp.lt.s32.totalorder %s699_s0, %s699_s0 }
  0x32   :  { %p706_p9 = por %p705_p8, %p704_p7 }
  0x34   :  { %p707_p10 = pnand %p706_p9, %p700_p6 }
  0x36   :  { %710 = shalt.err (!%p707_p10)
}
  0x37   :  { %79 = dma.hbm_to_vmem [thread:$0]  %s921_s6, 2048, %s74_s28, [#allocation9], %s764_s19, %s764_s19, %s765_s20  }
  0x38   :  { %751 = dma.done.wait [#allocation3], 128  }
  0x39   :  { %752 = vsyncadd [#allocation3], 4294967168 }
  0x3a   :  { %753 = dma.done.wait [#allocation6], 2176  }
  0x3b   :  { %754 = vsyncadd [#allocation6], 4294965120 }
  0x3c   :  { %755 = dma.done.wait [#allocation9], 4096  }
  0x3d   :  { %756 = vsyncadd [#allocation9], 4294963200  ;;  %v768_v0 = vmov 0.0   ;;  %vm769_vm0 = vmmov 0   ;;  %v113_v1 = vld [vmem:[#allocation7 + $0x78] sm:$0xff]  ;;  %v112_v2 = vld [vmem:[#allocation7 + $0x70] sm:$0xff] }
  0x3e   :  { %487 = vmatprep.subr.mxu0 %v768_v0  ;;  %519 = vmatprep.mubr.msk.f32.mxu0 %vm769_vm0, %v768_v0  ;;  %v111_v3 = vld [vmem:[#allocation7 + $0x68] sm:$0xff]  ;;  %v110_v4 = vld [vmem:[#allocation7 + $0x60] sm:$0xff]  ;;  %v207_v5 = vld [vmem:[#allocation8 + $0x78] sm:$0xff]  ;;  %s771_s15 = smov [#allocation11]  }
  0x3f   :  { %522 = vmatprep.subr.mxu1 %v768_v0  ;;  %554 = vmatprep.mubr.msk.f32.mxu1 %vm769_vm0, %v768_v0  ;;  %v109_v6 = vld [vmem:[#allocation7 + $0x58] sm:$0xff]  ;;  %v206_v7 = vld [vmem:[#allocation8 + $0x70] sm:$0xff]  ;;  %v205_v8 = vld [vmem:[#allocation8 + $0x68] sm:$0xff]  ;;  %s408_s16 = sshll.u32 %s771_s15, 4  ;;  %s409_s16 = int_to_ptr.vmem [resolvable:$true] %s408_s16 }
  0x40   :  { %488 = vmatpush3.msra.mxu0 %v113_v1  ;;  %523 = vmatpush3.msra.mxu1 %v207_v5  ;;  %v108_v9 = vld [vmem:[#allocation7 + $0x50] sm:$0xff]  ;;  %v204_v10 = vld [vmem:[#allocation8 + $0x60] sm:$0xff]  ;;  %v107_v11 = vld [vmem:[#allocation7 + $0x48] sm:$0xff] }
  0x41   :  { %489 = vmatprep.subr.mxu0 %v768_v0  ;;  %524 = vmatprep.subr.mxu1 %v768_v0  ;;  %v203_v12 = vld [vmem:[#allocation8 + $0x58] sm:$0xff]  ;;  %v106_v13 = vld [vmem:[#allocation7 + $0x40] sm:$0xff]  ;;  %v202_v14 = vld [vmem:[#allocation8 + $0x50] sm:$0xff] }
  0x42   :  { %490 = vmatpush3.msra.mxu0 %v112_v2  ;;  %525 = vmatpush3.msra.mxu1 %v206_v7  ;;  %v105_v15 = vld [vmem:[#allocation7 + $0x38] sm:$0xff]  ;;  %v201_v16 = vld [vmem:[#allocation8 + $0x48] sm:$0xff]  ;;  %v104_v17 = vld [vmem:[#allocation7 + $0x30] sm:$0xff] }
  0x43   :  { %491 = vmatprep.subr.mxu0 %v768_v0  ;;  %526 = vmatprep.subr.mxu1 %v768_v0  ;;  %v200_v18 = vld [vmem:[#allocation8 + $0x40] sm:$0xff]  ;;  %v103_v19 = vld [vmem:[#allocation7 + $0x28] sm:$0xff]  ;;  %v199_v20 = vld [vmem:[#allocation8 + $0x38] sm:$0xff] }
  0x44   :  { %492 = vmatpush3.msra.mxu0 %v111_v3  ;;  %527 = vmatpush3.msra.mxu1 %v205_v8  ;;  %v102_v21 = vld [vmem:[#allocation7 + $0x20] sm:$0xff]  ;;  %v198_v22 = vld [vmem:[#allocation8 + $0x30] sm:$0xff]  ;;  %v101_v23 = vld [vmem:[#allocation7 + $0x18] sm:$0xff] }
  0x45   :  { %493 = vmatprep.subr.mxu0 %v768_v0  ;;  %528 = vmatprep.subr.mxu1 %v768_v0  ;;  %v197_v24 = vld [vmem:[#allocation8 + $0x28] sm:$0xff]  ;;  %v100_v25 = vld [vmem:[#allocation7 + $0x10] sm:$0xff]  ;;  %v196_v26 = vld [vmem:[#allocation8 + $0x20] sm:$0xff] }
  0x46   :  { %494 = vmatpush3.msra.mxu0 %v110_v4  ;;  %529 = vmatpush3.msra.mxu1 %v204_v10  ;;  %v99_v27 = vld [vmem:[#allocation7 + $0x8] sm:$0xff]  ;;  %v195_v28 = vld [vmem:[#allocation8 + $0x18] sm:$0xff]  ;;  %v98_v29 = vld [vmem:[#allocation7] sm:$0xff] }
  0x47   :  { %495 = vmatprep.subr.mxu0 %v768_v0  ;;  %530 = vmatprep.subr.mxu1 %v768_v0  ;;  %v97_v30 = vld [vmem:[#allocation2] sm:$0xff]  ;;  %v193_v32 = vld [vmem:[#allocation8 + $0x8] sm:$0xff]  ;;  %v192_v33 = vld [vmem:[#allocation8] sm:$0xff] }
  0x48   :  { %496 = vmatpush3.msra.mxu0 %v109_v6  ;;  %531 = vmatpush3.msra.mxu1 %v203_v12  ;;  %v194_v31 = vld [vmem:[#allocation8 + $0x10] sm:$0xff]  ;;  %v301_v34 = vld [vmem:[#allocation10 + $0x78] sm:$0xff]  ;;  %v299_v36 = vld [vmem:[#allocation10 + $0x68] sm:$0xff] }
  0x49   :  { %497 = vmatprep.subr.mxu0 %v768_v0  ;;  %532 = vmatprep.subr.mxu1 %v768_v0  ;;  %v300_v35 = vld [vmem:[#allocation10 + $0x70] sm:$0xff]  ;;  %v298_v37 = vld [vmem:[#allocation10 + $0x60] sm:$0xff]  ;;  %v297_v38 = vld [vmem:[#allocation10 + $0x58] sm:$0xff] }
  0x4a   :  { %498 = vmatpush3.msra.mxu0 %v108_v9  ;;  %533 = vmatpush3.msra.mxu1 %v202_v14  ;;  %v296_v39 = vld [vmem:[#allocation10 + $0x50] sm:$0xff]  ;;  %v295_v40 = vld [vmem:[#allocation10 + $0x48] sm:$0xff]  ;;  %v294_v41 = vld [vmem:[#allocation10 + $0x40] sm:$0xff] }
  0x4b   :  { %499 = vmatprep.subr.mxu0 %v768_v0  ;;  %534 = vmatprep.subr.mxu1 %v768_v0  ;;  %v293_v42 = vld [vmem:[#allocation10 + $0x38] sm:$0xff]  ;;  %v292_v43 = vld [vmem:[#allocation10 + $0x30] sm:$0xff]  ;;  %v291_v44 = vld [vmem:[#allocation10 + $0x28] sm:$0xff] }
  0x4c   :  { %500 = vmatpush3.msra.mxu0 %v107_v11  ;;  %535 = vmatpush3.msra.mxu1 %v201_v16  ;;  %v290_v45 = vld [vmem:[#allocation10 + $0x20] sm:$0xff]  ;;  %v289_v46 = vld [vmem:[#allocation10 + $0x18] sm:$0xff]  ;;  %v433_v47 = vld [vmem:[%s918_s3] ss:$0 sm:$0xff] }
  0x4d   :  { %501 = vmatprep.subr.mxu0 %v768_v0  ;;  %536 = vmatprep.subr.mxu1 %v768_v0  ;;  %v288_v52 = vld [vmem:[#allocation10 + $0x10] sm:$0xff]  ;;  %v287_v53 = vld [vmem:[#allocation10 + $0x8] sm:$0xff]  ;;  %v286_v54 = vld [vmem:[#allocation10] sm:$0xff] }
  0x4e   :  { %502 = vmatpush3.msra.mxu0 %v106_v13  ;;  %537 = vmatpush3.msra.mxu1 %v200_v18  ;;  %v434_v55 = vld [vmem:[%s920_s5] ss:$0 sm:$0xff]  ;;  %v388_v62 = vld [vmem:[#allocation5] sm:$0xff]  ;;  %s770_s5 = smov [#allocation12]  }
  0x4f   :  { %503 = vmatprep.subr.mxu0 %v768_v0  ;;  %538 = vmatprep.subr.mxu1 %v768_v0  ;;  %v435_v60 = vld [vmem:[%s922_s7] ss:$0 sm:$0xff]  ;;  %s418_s7 = sshll.u32 %s770_s5, 4  ;;  %s419_s7 = int_to_ptr.vmem [resolvable:$true] %s418_s7 }
  0x50   :  { %504 = vmatpush3.msra.mxu0 %v105_v15  ;;  %539 = vmatpush3.msra.mxu1 %v199_v20  ;;  %s711_s17 = scalar_lea.vmem %s419_s7, 128  ;;  %p716_p12 = scmp.lt.s32.totalorder %s419_s7, %s419_s7 }
  0x51   :  { %505 = vmatprep.subr.mxu0 %v768_v0  ;;  %540 = vmatprep.subr.mxu1 %v768_v0  ;;  %p712_p11 = scmp.ne.s32.totalorder %s419_s7, %s711_s17  ;;  %p717_p13 = scmp.lt.s32.totalorder %s711_s17, %s711_s17 }
  0x52   :  { %506 = vmatpush3.msra.mxu0 %v104_v17  ;;  %541 = vmatpush3.msra.mxu1 %v198_v22 }
  0x53   :  { %507 = vmatprep.subr.mxu0 %v768_v0  ;;  %542 = vmatprep.subr.mxu1 %v768_v0  ;;  %p718_p0 = por %p717_p13, %p716_p12 }
  0x54   :  { %508 = vmatpush3.msra.mxu0 %v103_v19  ;;  %543 = vmatpush3.msra.mxu1 %v197_v24 }
  0x55   :  { %509 = vmatprep.subr.mxu0 %v768_v0  ;;  %544 = vmatprep.subr.mxu1 %v768_v0  ;;  %p719_p1 = pnand %p718_p0, %p712_p11 }
  0x56   :  { %510 = vmatpush3.msra.mxu0 %v102_v21  ;;  %545 = vmatpush3.msra.mxu1 %v196_v26 }
  0x57   :  { %511 = vmatprep.subr.mxu0 %v768_v0  ;;  %546 = vmatprep.subr.mxu1 %v768_v0 }
  0x58   :  { %512 = vmatpush3.msra.mxu0 %v101_v23  ;;  %547 = vmatpush3.msra.mxu1 %v195_v28 }
  0x59   :  { %513 = vmatprep.subr.mxu0 %v768_v0  ;;  %548 = vmatprep.subr.mxu1 %v768_v0 }
  0x5a   :  { %514 = vmatpush3.msra.mxu0 %v100_v25  ;;  %549 = vmatpush3.msra.mxu1 %v194_v31 }
  0x5b   :  { %515 = vmatprep.subr.mxu0 %v768_v0  ;;  %550 = vmatprep.subr.mxu1 %v768_v0 }
  0x5c   :  { %516 = vmatpush3.msra.mxu0 %v99_v27  ;;  %551 = vmatpush3.msra.mxu1 %v193_v32 }
  0x5d   :  { %517 = vmatprep.subr.mxu0 %v768_v0  ;;  %552 = vmatprep.subr.mxu1 %v768_v0 }
  0x5e   :  { %518 = vmatpush3.msra.mxu0 %v98_v29  ;;  %553 = vmatpush3.msra.mxu1 %v192_v33 }
  0x5f   :  { %520 = vmatmul.mubr.f32.vlgmr.msra.gmra.mxu0 %v97_v30  ;;  %557 = vmatprep.subr.mxu0 %v768_v0 }
  0x60   :  { %589 = vmatprep.mubr.msk.f32.mxu0 %vm769_vm0, %v768_v0  ;;  %558 = vmatpush3.msra.mxu0 %v301_v34 }
  0x61   :  { %559 = vmatprep.subr.mxu0 %v768_v0 }
  0x62   :  { %560 = vmatpush3.msra.mxu0 %v300_v35 }
  0x63   :  { %561 = vmatprep.subr.mxu0 %v768_v0 }
  0x64   :  { %562 = vmatpush3.msra.mxu0 %v299_v36 }
  0x65   :  { %563 = vmatprep.subr.mxu0 %v768_v0 }
  0x66   :  { %564 = vmatpush3.msra.mxu0 %v298_v37 }
  0x67   :  { %565 = vmatprep.subr.mxu0 %v768_v0 }
  0x68   :  { %566 = vmatpush3.msra.mxu0 %v297_v38 }
  0x69   :  { %567 = vmatprep.subr.mxu0 %v768_v0 }
  0x6a   :  { %568 = vmatpush3.msra.mxu0 %v296_v39 }
  0x6b   :  { %569 = vmatprep.subr.mxu0 %v768_v0 }
  0x6c   :  { %570 = vmatpush3.msra.mxu0 %v295_v40 }
  0x6d   :  { %571 = vmatprep.subr.mxu0 %v768_v0 }
  0x6e   :  { %572 = vmatpush3.msra.mxu0 %v294_v41 }
  0x6f   :  { %573 = vmatprep.subr.mxu0 %v768_v0 }
  0x70   :  { %574 = vmatpush3.msra.mxu0 %v293_v42 }
  0x71   :  { %575 = vmatprep.subr.mxu0 %v768_v0 }
  0x72   :  { %576 = vmatpush3.msra.mxu0 %v292_v43 }
  0x73   :  { %577 = vmatprep.subr.mxu0 %v768_v0 }
  0x74   :  { %578 = vmatpush3.msra.mxu0 %v291_v44 }
  0x75   :  { %579 = vmatprep.subr.mxu0 %v768_v0 }
  0x76   :  { %580 = vmatpush3.msra.mxu0 %v290_v45 }
  0x77   :  { %581 = vmatprep.subr.mxu0 %v768_v0 }
  0x78   :  { %582 = vmatpush3.msra.mxu0 %v289_v46 }
  0x79   :  { %583 = vmatprep.subr.mxu0 %v768_v0 }
  0x7a   :  { %584 = vmatpush3.msra.mxu0 %v288_v52 }
  0x7b   :  { %585 = vmatprep.subr.mxu0 %v768_v0 }
  0x7c   :  { %586 = vmatpush3.msra.mxu0 %v287_v53 }
  0x7d   :  { %587 = vmatprep.subr.mxu0 %v768_v0 }
  0x7e   :  { %588 = vmatpush3.msra.mxu0 %v286_v54 }
 0x11f   :  { %v187_v48 = vpop.f32.mrf.mxu0 }
 0x120   :  { %v188_v49 = vadd.f32 %v433_v47, %v187_v48 }
 0x121   :  { %v521_v50 = vpop.f32.mrf.mxu0 }
 0x122   :  { %v191_v51 = vmax.f32 %v188_v49, 0.0 }
 0x124   :  { %555 = vmatmul.mubr.f32.vlgmr.msra.gmra.mxu1 %v191_v51 }
 0x1e4   :  { %v281_v56 = vpop.f32.mrf.mxu1 }
 0x1e5   :  { %v282_v57 = vadd.f32 %v434_v55, %v281_v56 }
 0x1e6   :  { %v556_v58 = vpop.f32.mrf.mxu1 }
 0x1e7   :  { %v285_v59 = vmax.f32 %v282_v57, 0.0 }
 0x1e9   :  { %590 = vmatmul.mubr.f32.vlgmr.msra.gmra.mxu0 %v285_v59 }
 0x2a9   :  { %v375_v61 = vpop.f32.mrf.mxu0 }
 0x2aa   :  { %v376_v63 = vadd.f32 %v435_v60, %v375_v61 }
 0x2ab   :  { %v591_v1 = vpop.f32.mrf.mxu0 }
 0x2ac   :  { %379 = vmax.xlane.f32.xlu0 %v376_v63  ;;  %v389_v0 = vadd.f32 %v388_v62, %v376_v63 }
 0x2ae   :  { %v390_v2 = vmul.f32 10.0, %v389_v0 }
 0x2b0   :  { %391 = vmax.xlane.f32.xlu0 %v390_v2 }
 0x335   :  { %v380_v3 = vpop.xlane.xlu0 %379 }
 0x336   :  { %v381_v4 = vsub.f32 %v376_v63, %v380_v3 }
 0x338   :  { %v382_v5 = vmul.f32 1.442695, %v381_v4 }
 0x339   :  { %v392_v6 = vpop.xlane.xlu0 %391 }
 0x33a   :  { %603 = vpow2.f32 %v382_v5  ;;  %v393_v7 = vsub.f32 %v390_v2, %v392_v6 }
 0x33c   :  { %v394_v8 = vmul.f32 1.442695, %v393_v7 }
 0x33e   :  { %605 = vpow2.f32 %v394_v8 }
 0x347   :  { %v604_v9 = vpop.eup %603 }
 0x348   :  { %384 = vadd.xlane.f32.xlu1 %v604_v9 }
 0x34b   :  { %v606_v10 = vpop.eup %605 }
 0x34c   :  { %396 = vadd.xlane.f32.xlu1 %v606_v10 }
 0x3d1   :  { %v385_v11 = vpop.xlane.xlu1 %384 }
 0x3d2   :  { %607 = vrcp.f32 %v385_v11 }
 0x3d5   :  { %v397_v12 = vpop.xlane.xlu1 %396 }
 0x3d6   :  { %609 = vrcp.f32 %v397_v12 }
 0x3df   :  { %v608_v13 = vpop.eup %607 }
 0x3e0   :  { %v387_v14 = vmul.f32 %v608_v13, %v604_v9 }
 0x3e2   :  { %401 = vst [vmem:[#allocation12] sm:$0xff] %v387_v14 }
 0x3e3   :  { %v610_v15 = vpop.eup %609 }
 0x3e4   :  { %722 = shalt.err (!%p719_p1)
}
 0x3e5   :  { %421 = dma.vmem_to_hbm [thread:$0]  %s419_s7, 128, %s924_s9, [#allocation13]   ;;  %v399_v16 = vmul.f32 %v610_v15, %v606_v10 }
 0x3e6   :  { %s731_s20 = scalar_lea.vmem %s409_s16, 128  ;;  %p736_p3 = scmp.lt.s32.totalorder %s409_s16, %s409_s16 }
 0x3e7   :  { %400 = vst [vmem:[#allocation11] sm:$0xff] %v399_v16  ;;  %p732_p2 = scmp.ne.s32.totalorder %s409_s16, %s731_s20  ;;  %p737_p4 = scmp.lt.s32.totalorder %s731_s20, %s731_s20 }
 0x3e9   :  { %p738_p5 = por %p737_p4, %p736_p3 }
 0x3eb   :  { %p739_p6 = pnand %p738_p5, %p732_p2 }
 0x3ed   :  { %742 = shalt.err (!%p739_p6)
}
 0x3ee   :  { %411 = dma.vmem_to_hbm [thread:$0]  %s409_s16, 128, %s923_s8, [#allocation4]  }
 0x3ef   :  { %757 = dma.done.wait [#allocation4], 128  }
 0x3f0   :  { %758 = vsyncadd [#allocation4], 4294967168 }
 0x3f1   :  { %759 = dma.done.wait [#allocation13], 128  }
 0x3f2   :  { %760 = vsyncadd [#allocation13], 4294967168 }
 0x3f3   :  { %428 = vsyncpa [#allocation3], 1 }
 0x3f4   :  { %429 = vsyncpa [#allocation6], 1 }
 0x3f5   :  { %430 = vsyncpa [#allocation9], 1 }
 0x3f6   :  { %431 = vsyncpa [#allocation4], 1 }
 0x3f7   :  { %432 = vsyncpa [#allocation13], 1 }

</bundles_post_ra>
